<compile_context>
chip_gen: v7x
topology: tpu7x:2x2x1
jax: 0.10.0
libtpu: 0.0.40
codegen_flags: <defaults>
</compile_context>

<pallas_src>
import jax
import jax.numpy as jnp
from jax.experimental import pallas as pl
from jax.experimental.pallas import tpu as pltpu

MARGIN = 2.0
_EPS = 1e-6  # torch.nn.functional.pairwise_distance default eps


def _loss_kernel(o1_ref, o2_ref, ls_ref, logits_ref, labels_ref, out_ref):
    # --- contrastive part ----------------------------------------------------
    # NOTE: eps is added to every component, faithfully mirroring
    # torch.nn.functional.pairwise_distance semantics (not a bug).
    diff = o1_ref[...].astype(jnp.float32) - o2_ref[...].astype(jnp.float32) + _EPS
    d2 = jnp.sum(diff * diff, axis=-1, keepdims=True)            # (B, 1) squared dist
    d = jnp.sqrt(d2)                                              # only needed for hinge
    ls = ls_ref[...].astype(jnp.float32)                          # (B, 1)
    hinge = jnp.maximum(MARGIN - d, 0.0)
    # similar-pair term uses d2 directly (avoids sqrt->square rounding + a mul)
    loss_contrastive = jnp.mean((1.0 - ls) * d2 + ls * (hinge * hinge))

    # --- cross entropy over both heads stacked as (2B, C) --------------------
    logits = logits_ref[...].astype(jnp.float32)                  # (2B, C)
    two_b, c = logits.shape
    m = jnp.max(logits, axis=-1, keepdims=True)
    z = logits - m
    lse = jnp.log(jnp.sum(jnp.exp(z), axis=-1, keepdims=True)) + m  # (2B, 1)
    # in-kernel "one-hot" selection from the integer labels (VPU filler, no DMA)
    col = jax.lax.broadcasted_iota(jnp.int32, (two_b, c), 1)
    lab = labels_ref[...]                                         # (2B, 1) int32
    picked = jnp.sum(jnp.where(col == lab, logits, 0.0), axis=-1, keepdims=True)
    # sum over 2B rows / B  ==  mean-CE(head1) + mean-CE(head2)
    b = two_b // 2
    ce_total = jnp.sum(lse - picked) / jnp.float32(b)

    out_ref[0, 0] = loss_contrastive + ce_total


def contrastive_and_ce_loss(output1, output2, output3, output4,
                            label_s, label_o1, label_o2):
    """Plain-JAX glue: stack the two CE heads, cast labels, call the kernel."""
    B = output1.shape[0]
    label_s = label_s.reshape(B, 1).astype(jnp.float32)
    logits = jnp.concatenate([output3, output4], axis=0)                       # (2B, C)
    labels = jnp.concatenate([label_o1, label_o2], axis=0).reshape(2 * B, 1)   # (2B, 1)
    labels = labels.astype(jnp.int32)

    out = pl.pallas_call(
        _loss_kernel,
        out_shape=jax.ShapeDtypeStruct((1, 1), jnp.float32),
        # empty grid: every input is a single full-array VMEM block
        in_specs=[
            pl.BlockSpec(memory_space=pltpu.MemorySpace.VMEM),  # output1 (B, D)
            pl.BlockSpec(memory_space=pltpu.MemorySpace.VMEM),  # output2 (B, D)
            pl.BlockSpec(memory_space=pltpu.MemorySpace.VMEM),  # label_s (B, 1)
            pl.BlockSpec(memory_space=pltpu.MemorySpace.VMEM),  # logits  (2B, C)
            pl.BlockSpec(memory_space=pltpu.MemorySpace.VMEM),  # labels  (2B, 1) int32
        ],
        # scalar loss goes out through SMEM (no padded (8,128) VMEM tile / DMA)
        out_specs=pl.BlockSpec(memory_space=pltpu.MemorySpace.SMEM),
    )(output1, output2, label_s, logits, labels)
    return out[0, 0]


def _reference(output1, output2, output3, output4, label_s, label_o1, label_o2):
    """Pure-JAX reference (faithful to the torch formulation) for sanity checking."""
    diff = output1 - output2 + _EPS
    d = jnp.sqrt(jnp.sum(diff * diff, axis=-1, keepdims=True))
    ls = label_s.reshape(-1, 1)
    lc = jnp.mean((1.0 - ls) * d ** 2 + ls * jnp.clip(MARGIN - d, 0.0) ** 2)

    def ce(logits, labels):
        logz = jax.nn.log_softmax(logits, axis=-1)
        return -jnp.mean(jnp.take_along_axis(logz, labels[:, None], axis=-1))

    return lc + ce(output3, label_o1) + ce(output4, label_o2)


# TODO(synk): the MNASNet backbone of SiameseNetwork (cnn1.layers conv stack,
# dropout + Linear heads) is not implemented as a Pallas kernel; this kernel
# covers the contrastive + cross-entropy loss computed on its four outputs.

if __name__ == "__main__":
    B, D, C = 8, 128, 16  # batch, embedding dim (fc1 -> 128), n_class

    key = jax.random.PRNGKey(0)
    k1, k2, k3, k4, k5, k6, k7 = jax.random.split(key, 7)

    output1 = jax.random.normal(k1, (B, D), dtype=jnp.float32)
    output2 = jax.random.normal(k2, (B, D), dtype=jnp.float32)
    output3 = jax.random.normal(k3, (B, C), dtype=jnp.float32)
    output4 = jax.random.normal(k4, (B, C), dtype=jnp.float32)
    label_s = jax.random.bernoulli(k5, 0.5, (B, 1)).astype(jnp.float32)
    label_o1 = jax.random.randint(k6, (B,), 0, C, dtype=jnp.int32)
    label_o2 = jax.random.randint(k7, (B,), 0, C, dtype=jnp.int32)

    loss = contrastive_and_ce_loss(output1, output2, output3, output4,
                                   label_s, label_o1, label_o2)
    loss = jax.block_until_ready(loss)

    ref = _reference(output1, output2, output3, output4,
                     label_s, label_o1, label_o2)
    assert jnp.allclose(loss, ref, rtol=1e-5, atol=1e-5), (loss, ref)

    print("KERNEL_OK")
</pallas_src>

<mosaic_0001>
module attributes {stable_mosaic.version = 11 : i64} {
  func.func @_loss_kernel(%arg0: memref<8x128xf32, #tpu.memory_space<vmem>>, %arg1: memref<8x128xf32, #tpu.memory_space<vmem>>, %arg2: memref<8x1xf32, #tpu.memory_space<vmem>>, %arg3: memref<16x16xf32, #tpu.memory_space<vmem>>, %arg4: memref<16x1xi32, #tpu.memory_space<vmem>>, %arg5: memref<1x1xf32, #tpu.memory_space<smem>>) attributes {dimension_semantics = [], scalar_prefetch = 0 : i64, scratch_operands = 0 : i64, tpu.core_type = #tpu.core_type<tc>} {
    %c0 = arith.constant 0 : index
    %c0_0 = arith.constant 0 : index
    %0 = vector.load %arg0[%c0, %c0_0] : memref<8x128xf32, #tpu.memory_space<vmem>>, vector<8x128xf32>
    %c0_1 = arith.constant 0 : index
    %c0_2 = arith.constant 0 : index
    %1 = vector.load %arg1[%c0_1, %c0_2] : memref<8x128xf32, #tpu.memory_space<vmem>>, vector<8x128xf32>
    %2 = arith.subf %0, %1 : vector<8x128xf32>
    %cst = arith.constant 9.99999997E-7 : f32
    %3 = vector.broadcast %cst : f32 to vector<8x128xf32>
    %4 = arith.addf %2, %3 : vector<8x128xf32>
    %5 = arith.mulf %4, %4 : vector<8x128xf32>
    %cst_3 = arith.constant dense<0.000000e+00> : vector<8xf32>
    %6 = vector.multi_reduction <add>, %5, %cst_3 [1] : vector<8x128xf32> to vector<8xf32>
    %7 = vector.shape_cast %6 : vector<8xf32> to vector<8x1xf32>
    %8 = math.sqrt %7 : vector<8x1xf32>
    %c0_4 = arith.constant 0 : index
    %c0_5 = arith.constant 0 : index
    %9 = vector.load %arg2[%c0_4, %c0_5] : memref<8x1xf32, #tpu.memory_space<vmem>>, vector<8x1xf32>
    %cst_6 = arith.constant 2.000000e+00 : f32
    %10 = vector.broadcast %cst_6 : f32 to vector<8x1xf32>
    %11 = arith.subf %10, %8 : vector<8x1xf32>
    %cst_7 = arith.constant 0.000000e+00 : f32
    %12 = vector.broadcast %cst_7 : f32 to vector<8x1xf32>
    %13 = arith.maximumf %11, %12 : vector<8x1xf32>
    %cst_8 = arith.constant 1.000000e+00 : f32
    %14 = vector.broadcast %cst_8 : f32 to vector<8x1xf32>
    %15 = arith.subf %14, %9 : vector<8x1xf32>
    %16 = arith.mulf %15, %7 : vector<8x1xf32>
    %17 = arith.mulf %13, %13 : vector<8x1xf32>
    %18 = arith.mulf %9, %17 : vector<8x1xf32>
    %19 = arith.addf %16, %18 : vector<8x1xf32>
    %20 = vector.shape_cast %19 : vector<8x1xf32> to vector<1x8x1xf32>
    %cst_9 = arith.constant dense<0.000000e+00> : vector<1xf32>
    %21 = vector.multi_reduction <add>, %20, %cst_9 [1, 2] : vector<1x8x1xf32> to vector<1xf32>
    %22 = vector.shape_cast %21 : vector<1xf32> to vector<1x1x1xf32>
    %23 = vector.extract %22[0, 0, 0] : f32 from vector<1x1x1xf32>
    %cst_10 = arith.constant 8.000000e+00 : f32
    %24 = arith.divf %23, %cst_10 : f32
    %c0_11 = arith.constant 0 : index
    %c0_12 = arith.constant 0 : index
    %25 = vector.load %arg3[%c0_11, %c0_12] : memref<16x16xf32, #tpu.memory_space<vmem>>, vector<16x16xf32>
    %cst_13 = arith.constant dense<0xFF800000> : vector<16xf32>
    %26 = vector.multi_reduction <maximumf>, %25, %cst_13 [1] : vector<16x16xf32> to vector<16xf32>
    %27 = vector.shape_cast %26 : vector<16xf32> to vector<16x1xf32>
    %28 = vector.broadcast %27 : vector<16x1xf32> to vector<16x16xf32>
    %29 = arith.subf %25, %28 : vector<16x16xf32>
    %30 = math.exp %29 : vector<16x16xf32>
    %cst_14 = arith.constant dense<0.000000e+00> : vector<16xf32>
    %31 = vector.multi_reduction <add>, %30, %cst_14 [1] : vector<16x16xf32> to vector<16xf32>
    %32 = vector.shape_cast %31 : vector<16xf32> to vector<16x1xf32>
    %33 = math.log %32 : vector<16x1xf32>
    %34 = arith.addf %33, %27 : vector<16x1xf32>
    %35 = tpu.iota {dimensions = array<i32: 1>} : vector<16x16xi32>
    %c0_15 = arith.constant 0 : index
    %c0_16 = arith.constant 0 : index
    %36 = vector.load %arg4[%c0_15, %c0_16] : memref<16x1xi32, #tpu.memory_space<vmem>>, vector<16x1xi32>
    %37 = vector.broadcast %36 : vector<16x1xi32> to vector<16x16xi32>
    %38 = arith.cmpi eq, %35, %37 : vector<16x16xi32>
    %cst_17 = arith.constant 0.000000e+00 : f32
    %39 = vector.broadcast %cst_17 : f32 to vector<16x16xf32>
    %40 = arith.select %38, %25, %39 : vector<16x16xi1>, vector<16x16xf32>
    %cst_18 = arith.constant dense<0.000000e+00> : vector<16xf32>
    %41 = vector.multi_reduction <add>, %40, %cst_18 [1] : vector<16x16xf32> to vector<16xf32>
    %42 = vector.shape_cast %41 : vector<16xf32> to vector<16x1xf32>
    %43 = arith.subf %34, %42 : vector<16x1xf32>
    %44 = vector.shape_cast %43 : vector<16x1xf32> to vector<1x16x1xf32>
    %cst_19 = arith.constant dense<0.000000e+00> : vector<1xf32>
    %45 = vector.multi_reduction <add>, %44, %cst_19 [1, 2] : vector<1x16x1xf32> to vector<1xf32>
    %46 = vector.shape_cast %45 : vector<1xf32> to vector<1x1x1xf32>
    %47 = vector.extract %46[0, 0, 0] : f32 from vector<1x1x1xf32>
    %cst_20 = arith.constant 8.000000e+00 : f32
    %48 = arith.divf %47, %cst_20 : f32
    %49 = arith.addf %24, %48 : f32
    %c0_21 = arith.constant 0 : index
    %c0_22 = arith.constant 0 : index
    %50 = memref.load %arg5[%c0_21, %c0_22] : memref<1x1xf32, #tpu.memory_space<smem>>
    memref.store %49, %arg5[%c0_21, %c0_22] : memref<1x1xf32, #tpu.memory_space<smem>>
    return
  }
}

</mosaic_0001>

<bundles_post_ra>
// kernel: tpu_custom_call.1
= control target key start
LH: loop header
LB: loop body
LE: loop exit
PB: predicated region body
PF: predicated region fallthrough
CT: control target
= control target key end

     0   :  { %vm59_vm0 = vcmask 130048   ;;  %v167_v4 = vmov 0   ;;  %s241_s0 = inlined_call_operand.vmem [shape: f32[8,128], index: 0, kind: input, shape index: {}]   ;;  %s242_s1 = inlined_call_operand.vmem [shape: f32[8,128], index: 1, kind: input, shape index: {}]   ;;  %s243_s2 = inlined_call_operand.vmem [shape: f32[8,1], index: 2, kind: input, shape index: {}]   ;;  %s244_s3 = inlined_call_operand.vmem [shape: f32[16,16], index: 3, kind: input, shape index: {}]   ;;  %s245_s4 = inlined_call_operand.vmem [shape: s32[16,1], index: 4, kind: input, shape index: {}]   ;;  %s246_s5 = inlined_call_operand.hbm [shape: f32[1,1], index: 5, kind: output, shape index: {}]  }
   0x1   :  { %v57_v0 = vld [vmem:[%s244_s3] sm:$0xff]  ;;  %v58_v1 = vld [vmem:[%s244_s3 + $0x8] sm:$0xff]  ;;  %143 = vset.pattern.permute.xlu1 %v167_v4  ;;  %144 = vset.pattern.permute.xlu0 %v167_v4 }
   0x2   :  { %v86_v2 = vld [vmem:[%s245_s4] sm:$0xff]  ;;  %v60_v3 = vsel %vm59_vm0, %v57_v0, -inf }
   0x3   :  { %v21_v5 = vld [vmem:[%s241_s0] sm:$0xff]  ;;  %61 = vmax.xlane.f32.xlu0 %v60_v3  ;;  %89 = vperm.xlu1 %143, %v86_v2  }
   0x4   :  { %v22_v6 = vld [vmem:[%s242_s1] sm:$0xff] }
   0x5   :  { %v23_v7 = vsub.f32 %v21_v5, %v22_v6 }
   0x6   :  { %10 = vsyncpa [#allocation3], 0  ;;  %v63_v8 = vsel %vm59_vm0, %v58_v1, -inf  ;;  %v87_v9 = vld [vmem:[%s245_s4 + $0x8] sm:$0xff]  ;;  %v84_v18 = vlaneseq  ;;  %v35_v32 = vld [vmem:[%s243_s2] sm:$0xff]  ;;  %vm43_vm5 = vcmask 7168  }
   0x7   :  { %v24_v10 = vadd.f32 1e-06, %v23_v7  ;;  %64 = vmax.xlane.f32.xlu0 %v63_v8  ;;  %92 = vperm.xlu1 %143, %v87_v9   ;;  %v38_v37 = vsub.f32 1.0, %v35_v32  ;;  %s155_s9 = scalar_lea.hbm %s246_s5, 16 }
   0x8   :  { %v85_v21 = vand.u32 127, %v84_v18  ;;  %p156_p0 = scmp.ne.s32.totalorder %s246_s5, %s155_s9  ;;  %p159_p1 = scmp.lt.u32.totalorder %s155_s9, %s246_s5 }
   0x9   :  { %v25_v11 = vmul.f32 %v24_v10, %v24_v10 }
   0xa   :  { %p161_p2 = pnand %p159_p1, %p156_p0 }
   0xb   :  { %26 = vadd.xlane.f32.xlu0 %v25_v11 }
  0x82   :  { %v90_v20 = vpop.permute.xlu1 %89 }
  0x83   :  { %vm94_vm1 = vcmp.eq.s32.totalorder %v85_v21, %v90_v20 }
  0x84   :  { %v96_v26 = vsel %vm94_vm1, %v57_v0, 0.0 }
  0x85   :  { %v98_v31 = vsel %vm59_vm0, %v96_v26, 0.0 }
  0x86   :  { %v93_v24 = vpop.permute.xlu1 %92 }
  0x87   :  { %vm95_vm2 = vcmp.eq.s32.totalorder %v85_v21, %v93_v24 }
  0x88   :  { %v97_v33 = vsel %vm95_vm2, %v58_v1, 0.0 }
  0x89   :  { %v101_v38 = vsel %vm59_vm0, %v97_v33, 0.0 }
  0x90   :  { %v62_v12 = vpop.xlane.xlu0 %61 }
  0x91   :  { %v66_v13 = vsub.f32 %v57_v0, %v62_v12 }
  0x93   :  { %v68_v14 = vmul.f32 1.442695, %v66_v13 }
  0x94   :  { %v65_v15 = vpop.xlane.xlu0 %64 }
  0x95   :  { %145 = vpow2.f32 %v68_v14  ;;  %v67_v16 = vsub.f32 %v58_v1, %v65_v15 }
  0x97   :  { %v70_v17 = vmul.f32 1.442695, %v67_v16 }
  0x98   :  { %v27_v19 = vpop.xlane.xlu0 %26 }
  0x99   :  { %147 = vpow2.f32 %v70_v17  ;;  %vm30_vm3 = vcmp.eq.f32.partialorder %v27_v19, inf  ;;  %v33_v29 = vand.u32 2147483648, %v27_v19  ;;  %vm32_vm4 = vcmp.eq.f32.partialorder %v27_v19, 0.0 }
  0x9a   :  { %149 = vrsqrt.f32 %v27_v19  ;;  %v39_v40 = vmul.f32 %v38_v37, %v27_v19 }
  0x9f   :  { %v146_v22 = vpop.eup %145 }
  0xa0   :  { %v72_v23 = vsel %vm59_vm0, %v146_v22, 0.0 }
  0xa1   :  { %73 = vadd.xlane.f32.xlu1 %v72_v23 }
  0xa3   :  { %v148_v25 = vpop.eup %147 }
  0xa4   :  { %v150_v27 = vpop.eup %149  ;;  %v75_v28 = vsel %vm59_vm0, %v148_v25, 0.0 }
  0xa5   :  { %76 = vadd.xlane.f32.xlu0 %v75_v28  ;;  %v29_v30 = vmul.f32 %v150_v27, %v27_v19 }
  0xa7   :  { %v31_v34 = vsel %vm30_vm3, %v27_v19, %v29_v30 }
  0xa8   :  { %v34_v35 = vsel %vm32_vm4, %v33_v29, %v31_v34 }
  0xa9   :  { %99 = vadd.xlane.f32.xlu0 %v98_v31  ;;  %v36_v36 = vsub.f32 2.0, %v34_v35 }
  0xab   :  { %v37_v39 = vmax.f32 %v36_v36, 0.0 }
  0xad   :  { %102 = vadd.xlane.f32.xlu0 %v101_v38  ;;  %v40_v41 = vmul.f32 %v37_v39, %v37_v39 }
  0xaf   :  { %v41_v42 = vmul.f32 %v40_v41, %v35_v32 }
  0xb1   :  { %v42_v43 = vadd.f32 %v41_v42, %v39_v40 }
  0xb3   :  { %v44_v44 = vsel %vm43_vm5, %v42_v43, 0.0 }
  0xb4   :  { %45 = vadd.xlane.f32.xlu0 %v44_v44 }
 0x12e   :  { %v74_v45 = vpop.xlane.xlu1 %73 }
 0x12f   :  { %151 = vlog2.f32 %v74_v45 }
 0x132   :  { %v77_v46 = vpop.xlane.xlu0 %76 }
 0x133   :  { %153 = vlog2.f32 %v77_v46 }
 0x136   :  { %v100_v47 = vpop.xlane.xlu0 %99 }
 0x139   :  { %v152_v48 = vpop.eup %151 }
 0x13a   :  { %v79_v49 = vmul.f32 0.6931472, %v152_v48  ;;  %v103_v52 = vpop.xlane.xlu0 %102 }
 0x13c   :  { %v82_v50 = vadd.f32 %v79_v49, %v62_v12 }
 0x13d   :  { %v154_v51 = vpop.eup %153 }
 0x13e   :  { %v81_v53 = vmul.f32 0.6931472, %v154_v51  ;;  %v104_v54 = vsub.f32 %v82_v50, %v100_v47 }
 0x140   :  { %v83_v55 = vadd.f32 %v81_v53, %v65_v15  ;;  %v106_v59 = vsel %vm43_vm5, %v104_v54, 0.0 }
 0x141   :  { %v46_v56 = vpop.xlane.xlu0 %45 }
 0x142   :  { %v105_v57 = vsub.f32 %v83_v55, %v103_v52  ;;  %v47_v58 = vrot.slane %v46_v56, 4 }
 0x144   :  { %v107_v60 = vsel %vm43_vm5, %v105_v57, 0.0  ;;  %v48_v61 = vadd.f32 %v47_v58, %v46_v56 }
 0x145   :  { %v108_v62 = vadd.f32 %v107_v60, %v106_v59 }
 0x146   :  { %v49_v63 = vrot.slane %v48_v61, 2 }
 0x147   :  { %109 = vadd.xlane.f32.xlu0 %v108_v62 }
 0x148   :  { %v50_v0 = vadd.f32 %v49_v63, %v48_v61 }
 0x14a   :  { %v51_v1 = vrot.slane %v50_v0, 1 }
 0x14c   :  { %v52_v2 = vadd.f32 %v51_v1, %v50_v0 }
 0x14e   :  { %137 = vpush %v52_v2 }
 0x17f   :  { %s138_s2 = spop %137 }
 0x180   :  { %s56_s4 = smul.f32 0.125, %s138_s2 }
 0x1d4   :  { %v110_v3 = vpop.xlane.xlu0 %109 }
 0x1d5   :  { %v111_v4 = vrot.slane %v110_v3, 4 }
 0x1d7   :  { %v112_v5 = vadd.f32 %v111_v4, %v110_v3 }
 0x1d9   :  { %v113_v6 = vrot.slane %v112_v5, 2 }
 0x1db   :  { %v114_v7 = vadd.f32 %v113_v6, %v112_v5 }
 0x1dd   :  { %v115_v8 = vrot.slane %v114_v7, 1 }
 0x1df   :  { %v116_v9 = vadd.f32 %v115_v8, %v114_v7 }
 0x1e1   :  { %139 = vpush %v116_v9 }
 0x212   :  { %s140_s29 = spop %139 }
 0x213   :  { %s120_s30 = smul.f32 0.125, %s140_s29 }
 0x215   :  { %s121_s6 = sadd.f32 %s120_s30, %s56_s4 }
 0x217   :  { %123 = sst [smem:[#allocation2]] %s121_s6 }
 0x218   :  { %164 = shalt.err (!%p161_p2)
}
 0x219   :  { %s168_s14 = smov [#allocation2]  }
 0x21a   :  { %131 = dma.smem_to_hbm %s168_s14, 16, %s246_s5, [#allocation3]  }
 0x21b   :  { %165 = dma.done.wait [#allocation3], 16  }
 0x21c   :  { %166 = vsyncadd [#allocation3], 4294967280 }
 0x21d   :  { %135 = sfence }
 0x21e   :  { %136 = vsyncpa [#allocation3], 1 }

</bundles_post_ra>
